<compile_context>
chip_gen: v6e
topology: v6e:2x2x1
jax: 0.10.0
libtpu: 0.0.40
codegen_flags: <defaults>
</compile_context>

<pallas_src>
import math

import jax
import jax.numpy as jnp
from jax import lax
from jax.experimental import pallas as pl
from jax.experimental.pallas import tpu as pltpu


# ------------------------------- tiling helpers -------------------------------

def _pick_tile(dim: int, pref: int, floor: int = 128) -> int:
    """Largest 128-aligned candidate <= pref that divides dim, else the full dim.
    Full-extent blocks are always legal; the cap keeps VMEM use predictable for the
    common multiple-of-128 shapes."""
    t = pref
    while t >= floor:
        if dim % t == 0:
            return t
        t //= 2
    return dim


def _heads_per_block(h: int, d_k: int) -> int:
    """Smallest divisor of h whose packed lane width (hb*d_k) is a multiple of 128;
    falls back to all heads (full d_model width, always a legal block)."""
    for hb in range(1, h + 1):
        if h % hb == 0 and (hb * d_k) % 128 == 0:
            return hb
    return h


# ----------------------------- projection matmul ------------------------------

def _matmul_f32out_kernel(a_ref, b_ref, o_ref):
    # f32 output: accumulate directly into the resident output block (no scratch copy).
    @pl.when(pl.program_id(2) == 0)
    def _():
        o_ref[...] = jnp.zeros_like(o_ref)

    o_ref[...] += jnp.dot(a_ref[...], b_ref[...], preferred_element_type=jnp.float32)


def _matmul_acc_kernel(a_ref, b_ref, o_ref, acc_ref):
    @pl.when(pl.program_id(2) == 0)
    def _():
        acc_ref[...] = jnp.zeros_like(acc_ref)

    acc_ref[...] += jnp.dot(a_ref[...], b_ref[...], preferred_element_type=jnp.float32)

    @pl.when(pl.program_id(2) == pl.num_programs(2) - 1)
    def _():
        o_ref[...] = acc_ref[...].astype(o_ref.dtype)


def matmul(a, b, *, out_dtype=None, tm=512, tn=512, tk=512):
    """a: (M, K), b: (K, N) -> (M, N). Tiled, pipelined MXU matmul (f32 accumulation)."""
    M, K = a.shape
    K2, N = b.shape
    assert K == K2
    out_dtype = a.dtype if out_dtype is None else out_dtype
    tm, tn, tk = _pick_tile(M, tm), _pick_tile(N, tn), _pick_tile(K, tk)

    f32_out = jnp.dtype(out_dtype) == jnp.dtype(jnp.float32)
    kernel = _matmul_f32out_kernel if f32_out else _matmul_acc_kernel
    scratch = [] if f32_out else [pltpu.VMEM((tm, tn), jnp.float32)]

    return pl.pallas_call(
        kernel,
        out_shape=jax.ShapeDtypeStruct((M, N), out_dtype),
        grid=(M // tm, N // tn, K // tk),
        in_specs=[pl.BlockSpec((tm, tk), lambda i, j, k: (i, k)),
                  pl.BlockSpec((tk, tn), lambda i, j, k: (k, j))],
        out_specs=pl.BlockSpec((tm, tn), lambda i, j, k: (i, j)),
        scratch_shapes=scratch,
        compiler_params=pltpu.CompilerParams(
            dimension_semantics=("parallel", "parallel", "arbitrary")),
    )(a, b)


# ------------------------- scaled dot-product attention -----------------------

def _make_attention_kernel(scale: float, hb: int, d_k: int, has_mask: bool):
    def kernel(*refs):
        if has_mask:
            q_ref, k_ref, v_ref, mask_ref, o_ref, m_sc, l_sc, acc_sc = refs
        else:
            q_ref, k_ref, v_ref, o_ref, m_sc, l_sc, acc_sc = refs

        kv = pl.program_id(3)

        @pl.when(kv == 0)
        def _():
            m_sc[...] = jnp.full_like(m_sc, -jnp.inf)
            l_sc[...] = jnp.zeros_like(l_sc)
            acc_sc[...] = jnp.zeros_like(acc_sc)

        q_blk = q_ref[0]                                       # (tq, hb*d_k) bf16
        q_blk = q_blk * jnp.asarray(scale, q_blk.dtype)        # fold 1/sqrt(d_k) into Q
        k_blk = k_ref[0]                                       # (tk, hb*d_k)
        v_blk = v_ref[0]                                       # (tk, hb*d_k)
        if has_mask:
            masked_out = mask_ref[0] == 0                      # (tq, tk) bool, shared over heads

        # Static unroll over the heads packed into this lane-dense block.
        for hh in range(hb):
            sl = slice(hh * d_k, (hh + 1) * d_k)
            # Contract last dims directly: no K-tile transpose materialised.
            s = lax.dot_general(q_blk[:, sl], k_blk[:, sl],
                                dimension_numbers=(((1,), (1,)), ((), ())),
                                preferred_element_type=jnp.float32)    # (tq, tk) f32
            if has_mask:
                s = jnp.where(masked_out, -1e9, s)

            # Online-softmax statistics stay in f32 (required for exact -1e9 masking).
            m_prev = m_sc[hh]                                          # (tq, 1)
            m_new = jnp.maximum(m_prev, s.max(axis=-1, keepdims=True))
            alpha = jnp.exp(m_prev - m_new)
            p = jnp.exp(s - m_new)                                     # (tq, tk) f32
            l_sc[:, sl] = alpha * l_sc[:, sl] + p.sum(axis=-1, keepdims=True)
            acc_sc[:, sl] = alpha * acc_sc[:, sl] + jnp.dot(
                p.astype(v_blk.dtype), v_blk[:, sl],
                preferred_element_type=jnp.float32)
            m_sc[hh] = m_new

        @pl.when(kv == pl.num_programs(3) - 1)
        def _():
            inv_l = pl.reciprocal(l_sc[...], approx=True)              # EUP vrcp, ~free
            o_ref[0] = (acc_sc[...] * inv_l).astype(o_ref.dtype)

    return kernel


def flash_attention(qp, kp, vp, mask, *, h, d_k, hb=None,
                    q_off=0, k_off=0, v_off=0, out_dtype=None,
                    tq_pref=256, tk_pref=256):
    """Flash attention over head-packed (B, S, *) projection slabs.

    qp/kp/vp: (B, S, cols) where the heads for this call live at column-block offsets
    q_off/k_off/v_off (in units of hb*d_k-wide blocks).  mask: (B, Sq, Sk) int8 or None.
    Output: (B, Sq, h*d_k) in merged-head layout (no transposes needed afterwards).
    """
    B, Sq, _ = qp.shape
    Sk = kp.shape[1]
    hb = _heads_per_block(h, d_k) if hb is None else hb
    w = hb * d_k
    tq = _pick_tile(Sq, tq_pref)
    tk = _pick_tile(Sk, tk_pref)
    scale = 1.0 / math.sqrt(d_k)
    has_mask = mask is not None
    out_dtype = qp.dtype if out_dtype is None else out_dtype

    in_specs = [
        pl.BlockSpec((1, tq, w), lambda b, hg, qi, ki: (b, qi, hg + q_off)),
        pl.BlockSpec((1, tk, w), lambda b, hg, qi, ki: (b, ki, hg + k_off)),
        pl.BlockSpec((1, tk, w), lambda b, hg, qi, ki: (b, ki, hg + v_off)),
    ]
    args = [qp, kp, vp]
    if has_mask:
        in_specs.append(pl.BlockSpec((1, tq, tk), lambda b, hg, qi, ki: (b, qi, ki)))
        args.append(mask)

    return pl.pallas_call(
        _make_attention_kernel(scale, hb, d_k, has_mask),
        out_shape=jax.ShapeDtypeStruct((B, Sq, h * d_k), out_dtype),
        grid=(B, h // hb, Sq // tq, Sk // tk),
        in_specs=in_specs,
        out_specs=pl.BlockSpec((1, tq, w), lambda b, hg, qi, ki: (b, qi, hg)),
        scratch_shapes=[pltpu.VMEM((hb, tq, 1), jnp.float32),   # running max per head
                        pltpu.VMEM((tq, w), jnp.float32),       # running sum (head-broadcast)
                        pltpu.VMEM((tq, w), jnp.float32)],      # output accumulator
        compiler_params=pltpu.CompilerParams(
            dimension_semantics=("parallel", "parallel", "parallel", "arbitrary")),
    )(*args)


# ------------------------------- full MHA block --------------------------------

def prepare_mha_params(w_q, w_k, w_v, w_o, compute_dtype=jnp.bfloat16):
    """One-time (outside the hot path) prep of PyTorch-layout (out, in) weights:
    transpose to (in, out), cast to the MXU compute dtype, and build the fused
    Wq|Wk|Wv matrix used for self-attention."""
    cd = compute_dtype
    w_q_t = jnp.asarray(w_q).T.astype(cd)
    w_k_t = jnp.asarray(w_k).T.astype(cd)
    w_v_t = jnp.asarray(w_v).T.astype(cd)
    w_o_t = jnp.asarray(w_o).T.astype(cd)
    return {
        "w_q_t": w_q_t, "w_k_t": w_k_t, "w_v_t": w_v_t, "w_o_t": w_o_t,
        "w_qkv_t": jnp.concatenate([w_q_t, w_k_t, w_v_t], axis=1),
        "compute_dtype": cd,
    }


def multi_head_attention_block(q, k, v, mask, params, h):
    """q: (B, Sq, d_model); k, v: (B, Sk, d_model); mask: (B, Sq, Sk) (1=keep) or None.
    params from prepare_mha_params. Matches the PyTorch module's forward (eval mode)."""
    cd = params["compute_dtype"]
    B, Sq, d_model = q.shape
    Sk = k.shape[1]
    assert d_model % h == 0
    d_k = d_model // h
    out_dtype = q.dtype

    hb = _heads_per_block(h, d_k)
    blocks_per_tensor = h // hb            # column-block offset unit in the fused slab

    mask_i8 = None
    if mask is not None:
        # int8 mask: 4x less attention-kernel bandwidth than f32, exact ==0 test.
        mask_i8 = (jnp.asarray(mask) != 0).astype(jnp.int8).reshape(B, Sq, Sk)

    if (q is k) and (k is v):
        # Self-attention: one fused QKV matmul (activation read once), attention
        # indexes Q/K/V straight out of the fused (B, S, 3*d_model) slab.
        x2d = q.reshape(B * Sq, d_model).astype(cd)
        qkv = matmul(x2d, params["w_qkv_t"], out_dtype=cd).reshape(B, Sq, 3 * d_model)
        ctx = flash_attention(qkv, qkv, qkv, mask_i8, h=h, d_k=d_k, hb=hb,
                              q_off=0, k_off=blocks_per_tensor,
                              v_off=2 * blocks_per_tensor, out_dtype=cd)
    else:
        qp = matmul(q.reshape(B * Sq, d_model).astype(cd), params["w_q_t"],
                    out_dtype=cd).reshape(B, Sq, d_model)
        kp = matmul(k.reshape(B * Sk, d_model).astype(cd), params["w_k_t"],
                    out_dtype=cd).reshape(B, Sk, d_model)
        vp = matmul(v.reshape(B * Sk, d_model).astype(cd), params["w_v_t"],
                    out_dtype=cd).reshape(B, Sk, d_model)
        ctx = flash_attention(qp, kp, vp, mask_i8, h=h, d_k=d_k, hb=hb, out_dtype=cd)

    # ctx is already in merged-head (B, Sq, d_model) layout: no transpose needed.
    # TODO(synk): training-time dropout on the attention probabilities is not
    # implemented (eval-mode identity, matching module.eval()).
    out = matmul(ctx.reshape(B * Sq, d_model), params["w_o_t"], out_dtype=jnp.float32)
    return out.reshape(B, Sq, d_model).astype(out_dtype)


# ------------------------------------ test -------------------------------------

def _reference(q, k, v, mask, w_q, w_k, w_v, w_o, h, cd=jnp.bfloat16):
    """Mirrors the kernel's numerics (bf16 MXU operands, f32 accumulation/softmax)."""
    B, Sq, d_model = q.shape
    Sk = k.shape[1]
    d_k = d_model // h
    scale = jnp.asarray(1.0 / math.sqrt(d_k), cd)

    def proj(x, w):
        y = jnp.dot(x.reshape(-1, d_model).astype(cd), jnp.asarray(w).T.astype(cd),
                    preferred_element_type=jnp.float32)
        return y.astype(cd).reshape(x.shape[0], -1, d_model)

    qp, kp, vp = proj(q, w_q), proj(k, w_k), proj(v, w_v)
    qh = qp.reshape(B, Sq, h, d_k).transpose(0, 2, 1, 3) * scale
    kh = kp.reshape(B, Sk, h, d_k).transpose(0, 2, 1, 3)
    vh = vp.reshape(B, Sk, h, d_k).transpose(0, 2, 1, 3)

    s = jnp.einsum("bhqd,bhkd->bhqk", qh, kh, preferred_element_type=jnp.float32)
    if mask is not None:
        s = jnp.where(jnp.asarray(mask)[:, None, :, :] == 0, -1e9, s)
    m = s.max(axis=-1, keepdims=True)
    p = jnp.exp(s - m)
    l = p.sum(axis=-1, keepdims=True)
    pv = jnp.einsum("bhqk,bhkd->bhqd", p.astype(cd), vh,
                    preferred_element_type=jnp.float32)
    x = (pv / l).astype(cd).transpose(0, 2, 1, 3).reshape(B * Sq, d_model)
    out = jnp.dot(x, jnp.asarray(w_o).T.astype(cd), preferred_element_type=jnp.float32)
    return out.reshape(B, Sq, d_model)


if __name__ == "__main__":
    B, S, d_model, h = 2, 8, 32, 4

    key = jax.random.PRNGKey(0)
    kq, kk, kv_, kwq, kwk, kwv, kwo = jax.random.split(key, 7)
    q = jax.random.normal(kq, (B, S, d_model), dtype=jnp.float32)
    k = jax.random.normal(kk, (B, S, d_model), dtype=jnp.float32)
    v = jax.random.normal(kv_, (B, S, d_model), dtype=jnp.float32)

    wscale = 1.0 / math.sqrt(d_model)
    w_q = jax.random.normal(kwq, (d_model, d_model), dtype=jnp.float32) * wscale
    w_k = jax.random.normal(kwk, (d_model, d_model), dtype=jnp.float32) * wscale
    w_v = jax.random.normal(kwv, (d_model, d_model), dtype=jnp.float32) * wscale
    w_o = jax.random.normal(kwo, (d_model, d_model), dtype=jnp.float32) * wscale

    # Causal mask shared across heads: (B, Sq, Sk), 1 = keep, 0 = mask out.
    mask = jnp.broadcast_to(jnp.tril(jnp.ones((S, S), jnp.float32)), (B, S, S))

    params = prepare_mha_params(w_q, w_k, w_v, w_o)

    # Cross-attention style call (distinct q/k/v -> separate projection matmuls).
    out = multi_head_attention_block(q, k, v, mask, params, h)
    out = jax.block_until_ready(out)
    ref = _reference(q, k, v, mask, w_q, w_k, w_v, w_o, h)
    assert out.shape == (B, S, d_model)
    assert jnp.allclose(out, ref, atol=3e-2, rtol=3e-2)

    # Self-attention call exercises the fused-QKV path.
    out_sa = multi_head_attention_block(q, q, q, mask, params, h)
    out_sa = jax.block_until_ready(out_sa)
    ref_sa = _reference(q, q, q, mask, w_q, w_k, w_v, w_o, h)
    assert jnp.allclose(out_sa, ref_sa, atol=3e-2, rtol=3e-2)

    print("KERNEL_OK")
</pallas_src>

<mosaic_0001>
module attributes {stable_mosaic.version = 11 : i64} {
  func.func @_matmul_acc_kernel(%arg0: i32, %arg1: i32, %arg2: i32, %arg3: memref<16x32xbf16, #tpu.memory_space<vmem>>, %arg4: memref<32x32xbf16, #tpu.memory_space<vmem>>, %arg5: memref<16x32xbf16, #tpu.memory_space<vmem>>, %arg6: memref<16x32xf32, #tpu.memory_space<vmem>>) attributes {dimension_semantics = [#tpu.dimension_semantics<parallel>, #tpu.dimension_semantics<parallel>, #tpu.dimension_semantics<arbitrary>], iteration_bounds = array<i64: 1, 1, 1>, scalar_prefetch = 0 : i64, scratch_operands = 1 : i64, tpu.core_type = #tpu.core_type<tc>, window_params = [{transform_indices = @transform_0, window_bounds = array<i64: 16, 32>}, {transform_indices = @transform_1, window_bounds = array<i64: 32, 32>}, {transform_indices = @transform_2, window_bounds = array<i64: 16, 32>}]} {
    %c0_i32 = arith.constant 0 : i32
    %0 = arith.cmpi eq, %arg2, %c0_i32 : i32
    %1 = arith.extui %0 : i1 to i32
    %c0_i32_0 = arith.constant 0 : i32
    %2 = arith.cmpi ne, %1, %c0_i32_0 : i32
    scf.if %2 {
      %cst_10 = arith.constant 0.000000e+00 : f32
      %12 = vector.broadcast %cst_10 : f32 to vector<16x32xf32>
      %c0_11 = arith.constant 0 : index
      %c0_12 = arith.constant 0 : index
      %13 = vector.load %arg6[%c0_11, %c0_12] : memref<16x32xf32, #tpu.memory_space<vmem>>, vector<16x32xf32>
      tpu.vector_store %arg6[%c0_11, %c0_12], %12 {strides = array<i32>} : memref<16x32xf32, #tpu.memory_space<vmem>>, vector<16x32xf32>,
    } else {
    }
    %c0 = arith.constant 0 : index
    %c0_1 = arith.constant 0 : index
    %3 = vector.load %arg6[%c0, %c0_1] : memref<16x32xf32, #tpu.memory_space<vmem>>, vector<16x32xf32>
    %c0_2 = arith.constant 0 : index
    %c0_3 = arith.constant 0 : index
    %4 = vector.load %arg3[%c0_2, %c0_3] : memref<16x32xbf16, #tpu.memory_space<vmem>>, vector<16x32xbf16>
    %c0_4 = arith.constant 0 : index
    %c0_5 = arith.constant 0 : index
    %5 = vector.load %arg4[%c0_4, %c0_5] : memref<32x32xbf16, #tpu.memory_space<vmem>>, vector<32x32xbf16>
    %cst = arith.constant dense<0.000000e+00> : vector<16x32xf32>
    %6 = tpu.matmul %4, %5, %cst {dimension_numbers = #tpu.dot_dimension_numbers<[1], [0], [0], [1], [0, 0, 1, 1], [], []>} : vector<16x32xbf16>, vector<32x32xbf16>, vector<16x32xf32> -> vector<16x32xf32>
    %7 = arith.addf %3, %6 : vector<16x32xf32>
    %c0_6 = arith.constant 0 : index
    %c0_7 = arith.constant 0 : index
    %8 = vector.load %arg6[%c0_6, %c0_7] : memref<16x32xf32, #tpu.memory_space<vmem>>, vector<16x32xf32>
    tpu.vector_store %arg6[%c0_6, %c0_7], %7 {strides = array<i32>} : memref<16x32xf32, #tpu.memory_space<vmem>>, vector<16x32xf32>,
    %c0_i32_8 = arith.constant 0 : i32
    %9 = arith.cmpi eq, %arg2, %c0_i32_8 : i32
    %10 = arith.extui %9 : i1 to i32
    %c0_i32_9 = arith.constant 0 : i32
    %11 = arith.cmpi ne, %10, %c0_i32_9 : i32
    scf.if %11 {
      %c0_10 = arith.constant 0 : index
      %c0_11 = arith.constant 0 : index
      %12 = vector.load %arg6[%c0_10, %c0_11] : memref<16x32xf32, #tpu.memory_space<vmem>>, vector<16x32xf32>
      %13 = arith.truncf %12 : vector<16x32xf32> to vector<16x32xbf16>
      %c0_12 = arith.constant 0 : index
      %c0_13 = arith.constant 0 : index
      %14 = vector.load %arg5[%c0_12, %c0_13] : memref<16x32xbf16, #tpu.memory_space<vmem>>, vector<16x32xbf16>
      tpu.vector_store %arg5[%c0_12, %c0_13], %13 {strides = array<i32>} : memref<16x32xbf16, #tpu.memory_space<vmem>>, vector<16x32xbf16>,
    } else {
    }
    return
  }
  func.func @transform_0(%arg0: i32, %arg1: i32, %arg2: i32) -> (i32, i32) {
    %c0_i32 = arith.constant 0 : i32
    return %arg0, %arg2 : i32, i32
  }
  func.func @transform_1(%arg0: i32, %arg1: i32, %arg2: i32) -> (i32, i32) {
    %c0_i32 = arith.constant 0 : i32
    return %arg2, %arg1 : i32, i32
  }
  func.func @transform_2(%arg0: i32, %arg1: i32, %arg2: i32) -> (i32, i32) {
    %c0_i32 = arith.constant 0 : i32
    return %arg0, %arg1 : i32, i32
  }
}

</mosaic_0001>

<bundles_post_ra>
// kernel: tpu_custom_call.1
= control target key start
LH: loop header
LB: loop body
LE: loop exit
PB: predicated region body
PF: predicated region fallthrough
CT: control target
= control target key end

     0   :  { %7 = vsyncpa [#allocation4], 0  ;;  %s296_s0 = inlined_call_operand.hbm [shape: bf16[16,32], index: 0, kind: input, shape index: {}]   ;;  %s297_s1 = inlined_call_operand.hbm [shape: bf16[32,32], index: 1, kind: input, shape index: {}]   ;;  %s298_s2 = inlined_call_operand.hbm [shape: bf16[16,32], index: 2, kind: output, shape index: {}]  }
   0x1   :  { %8 = vsyncpa [#allocation7], 0 }
   0x2   :  { %9 = vsyncpa [#allocation5], 0  ;;  %s251_s9 = smov [#allocation3]  }
   0x3   :  { %s15_s10 = sshll.u32 %s251_s9, 4  ;;  %s16_s10 = int_to_ptr.vmem [resolvable:$true] %s15_s10 }
   0x4   :  { %s193_s11 = scalar_lea.vmem %s16_s10, 128  ;;  %p198_p1 = scmp.lt.s32.totalorder %s16_s10, %s16_s10 }
   0x5   :  { %p194_p0 = scmp.ne.s32.totalorder %s16_s10, %s193_s11  ;;  %p199_p2 = scmp.lt.s32.totalorder %s193_s11, %s193_s11 }
   0x7   :  { %p200_p3 = por %p199_p2, %p198_p1 }
   0x9   :  { %p201_p4 = pnand %p200_p3, %p194_p0 }
   0xb   :  { %204 = shalt.err (!%p201_p4)
}
   0xc   :  { %s252_s12 = smov 64   ;;  %s253_s13 = smov 4  }
   0xd   :  { %21 = dma.hbm_to_vmem [thread:$0]  %s296_s0, 128, %s16_s10, [#allocation4], %s252_s12, %s252_s12, %s253_s13  }
   0xe   :  { %s254_s16 = smov [#allocation6]  }
   0xf   :  { %s27_s17 = sshll.u32 %s254_s16, 4  ;;  %s28_s17 = int_to_ptr.vmem [resolvable:$true] %s27_s17 }
  0x10   :  { %s213_s18 = scalar_lea.vmem %s28_s17, 256  ;;  %p218_p6 = scmp.lt.s32.totalorder %s28_s17, %s28_s17 }
  0x11   :  { %p214_p5 = scmp.ne.s32.totalorder %s28_s17, %s213_s18  ;;  %p219_p7 = scmp.lt.s32.totalorder %s213_s18, %s213_s18 }
  0x13   :  { %p220_p8 = por %p219_p7, %p218_p6 }
  0x15   :  { %p221_p9 = pnand %p220_p8, %p214_p5 }
  0x17   :  { %224 = shalt.err (!%p221_p9)
}
  0x18   :  { %33 = dma.hbm_to_vmem [thread:$0]  %s297_s1, 256, %s28_s17, [#allocation7], %s252_s12, %s252_s12, %s253_s13  }
  0x19   :  { %245 = dma.done.wait [#allocation4], 128  }
  0x1a   :  { %246 = vsyncadd [#allocation4], 4294967168 }
  0x1b   :  { %247 = dma.done.wait [#allocation7], 256  }
  0x1c   :  { %248 = vsyncadd [#allocation7], 4294967040  ;;  %vm45_vm0 = vcmask 261120   ;;  %v255_v0 = vmov 0.0   ;;  %vm256_vm1 = vmmov 0   ;;  %v182_v1 = vld [vmem:[#allocation6 + $0x8] sm:$0xff]  }
  0x1d   :  { %167 = vmatprep.subr.bf16.mxu0 %v255_v0  ;;  %171 = vmatprep.mubr.msk.bf16.mxu0 %vm256_vm1, %v255_v0  ;;  %46 = vst.msk [vmem:[#allocation2] sm:$0xff] %vm45_vm0, %v255_v0  ;;  %47 = vst.msk [vmem:[#allocation2 + $0x8] sm:$0xff] %vm45_vm0, %v255_v0  ;;  %v183_v2 = vld [vmem:[#allocation6] sm:$0xff]   ;;  %v184_v3 = vld [vmem:[#allocation3] sm:$0xff]   ;;  %vm135_vm2 = vcmask 257024   ;;  %s257_s0 = smov [#allocation8]  }
  0x1e   :  { %168 = vmatpush3.bf16.msra.mxu0 %v182_v1  ;;  %s143_s1 = sshll.u32 %s257_s0, 4  ;;  %s144_s1 = int_to_ptr.vmem [resolvable:$true] %s143_s1 }
  0x1f   :  { %169 = vmatprep.subr.bf16.mxu0 %v255_v0  ;;  %s225_s21 = scalar_lea.vmem %s144_s1, 128  ;;  %p230_p11 = scmp.lt.s32.totalorder %s144_s1, %s144_s1 }
  0x20   :  { %p226_p10 = scmp.ne.s32.totalorder %s144_s1, %s225_s21  ;;  %p231_p12 = scmp.lt.s32.totalorder %s225_s21, %s225_s21 }
  0x22   :  { %170 = vmatpush3.bf16.msra.mxu0 %v183_v2  ;;  %p232_p13 = por %p231_p12, %p230_p11 }
  0x24   :  { %v48_v4 = vld [vmem:[#allocation2] sm:$0xff]  ;;  %v49_v8 = vld [vmem:[#allocation2 + $0x8] sm:$0xff]  ;;  %p233_p0 = pnand %p232_p13, %p226_p10 }
  0x25   :  { %172 = vmatmul.mubr.msk.bf16.vlgmr.msra.gmra.mxu0 %vm45_vm0, %v184_v3 }
  0xe5   :  { %v111_v5 = vpop.f32.mrf.mxu0 }
  0xe6   :  { %v118_v6 = vadd.f32 %v111_v5, %v48_v4 }
  0xe7   :  { %v173_v7 = vpop.f32.mrf.mxu0 }
  0xe8   :  { %120 = vst.msk [vmem:[#allocation2] sm:$0xff] %vm45_vm0, %v118_v6 }
  0xe9   :  { %v114_v9 = vpop.f32.mrf.mxu0 }
  0xea   :  { %v119_v10 = vadd.f32 %v114_v9, %v49_v8 }
  0xeb   :  { %v174_v11 = vpop.f32.mrf.mxu0 }
  0xec   :  { %121 = vst.msk [vmem:[#allocation2 + $0x8] sm:$0xff] %vm45_vm0, %v119_v10 }
  0xef   :  { %v125_v12 = vld [vmem:[#allocation2] sm:$0xff] }
  0xf0   :  { %v162_v13 = vpack.c.bf16 %v125_v12, %v125_v12 }
  0xf2   :  { %136 = vst.msk [vmem:[#allocation8] sm:$0xf] %vm135_vm2, %v162_v13 }
  0xf3   :  { %v126_v14 = vld [vmem:[#allocation2 + $0x8] sm:$0xff] }
  0xf4   :  { %v163_v15 = vpack.c.bf16 %v126_v14, %v126_v14 }
  0xf6   :  { %137 = vst.msk [vmem:[#allocation8 + $0x4] sm:$0xf] %vm135_vm2, %v163_v15 }
  0xf7   :  { %236 = shalt.err (!%p233_p0)
}
  0xf8   :  { %149 = dma.vmem_to_hbm [thread:$0]  %s144_s1, 128, %s298_s2, [#allocation5], %s252_s12, %s252_s12, %s253_s13  }
  0xf9   :  { %249 = dma.done.wait [#allocation5], 128  }
  0xfa   :  { %250 = vsyncadd [#allocation5], 4294967168 }
  0xfb   :  { %153 = vsyncpa [#allocation4], 1 }
  0xfc   :  { %154 = vsyncpa [#allocation7], 1 }
  0xfd   :  { %155 = vsyncpa [#allocation5], 1 }

</bundles_post_ra>
